<compile_context>
chip_gen: v7x
topology: tpu7x:2x2x1
jax: 0.10.0
libtpu: 0.0.40
codegen_flags: <defaults>
</compile_context>

<pallas_src>
import functools

import jax
import jax.numpy as jnp
from jax.experimental import pallas as pl
from jax.experimental.pallas import tpu as pltpu


# --------------------------------------------------------------------------
# Helpers
# --------------------------------------------------------------------------
def _vmem_capacity_bytes():
    """Physical VMEM per core (falls back to 128 MiB if the query fails)."""
    try:
        cap = getattr(pltpu.get_tpu_info(), "vmem_capacity_bytes", None)
        if cap:
            return int(cap)
    except Exception:
        pass
    return 128 * 1024 * 1024


# --------------------------------------------------------------------------
# Wrapper (kernels are closures so they can capture static tiling constants)
# --------------------------------------------------------------------------
@functools.partial(jax.jit, static_argnames=("donate_x", "max_s_tile"))
def eca3d_layer(x, conv_weight, *, donate_x=False, max_s_tile=None):
    """x: (B, C, D, H, W); conv_weight: (k,) taps of Conv1d(1, 1, k, bias=False)."""
    B, C, D, H, W = (int(d) for d in x.shape)
    S = D * H * W
    k_size = int(conv_weight.shape[-1])
    pad = (k_size - 1) // 2
    itemsize = jnp.dtype(x.dtype).itemsize

    # ---- per-chip spatial tile sizing + explicit VMEM limit -----------------
    vmem_cap = _vmem_capacity_bytes()
    if vmem_cap <= 64 * 1024 * 1024:          # v7x-class: 64 MiB physical VMEM
        block_budget = 6 * 1024 * 1024
        vmem_limit = 48 * 1024 * 1024
    else:                                      # v5e / v6e: 128 MiB physical VMEM
        block_budget = 8 * 1024 * 1024
        vmem_limit = 64 * 1024 * 1024

    max_tile = max(128, (block_budget // max(1, C * itemsize)) // 128 * 128)
    if max_s_tile is not None:                 # test hook: force small tiles
        max_tile = max(128, min(max_tile, (int(max_s_tile) // 128) * 128))
    # TODO(synk): for very large C (C * itemsize > block_budget / 128) a C-tile
    # grid axis would also be needed; typical ECA channel counts are far below.

    if S <= max_tile:
        s_tile = S                             # single full-extent block: exact
        # dims, no masking, no edge block.
    else:
        s_tile = max_tile                      # 128-multiple, strictly < S; the
        # last block is a standard partial edge block.
    n_s = pl.cdiv(S, s_tile)

    # 2-way split of the S sweep so phase 1 keeps both v7x TensorCores busy
    # even when B == 1 (harmless on 1-core chips).
    n_split = 2 if n_s >= 2 else 1
    n_s_per = pl.cdiv(n_s, n_split)
    overshoot = (n_split * n_s_per) != n_s      # clamped duplicate tile exists
    needs_mask = (S % s_tile != 0) or overshoot

    xf = x.reshape(B, C, S)                     # free view, no HBM pass

    # ------------------------------------------------------------------
    # Phase 1: per-channel partial sums (reduction over S, split over cores)
    # ------------------------------------------------------------------
    def gate_sum_kernel(x_ref, sums_ref, acc_ref):
        s_idx = pl.program_id(2)

        @pl.when(s_idx == 0)
        def _init():
            acc_ref[...] = jnp.zeros_like(acc_ref)

        xblk = x_ref[0]                                    # (C, s_tile)
        if needs_mask:
            # Global tile index; for the ragged tail (and for the clamped
            # duplicate tile of the odd-split case) mask invalid lanes to zero.
            t = pl.program_id(0) * n_s_per + s_idx
            valid = S - t * s_tile                         # may be <= 0
            lane = jax.lax.broadcasted_iota(jnp.int32, xblk.shape, 1)
            xblk = jnp.where(lane < valid, xblk, 0)
        acc_ref[...] += jnp.sum(xblk, axis=-1, keepdims=True, dtype=jnp.float32)

        @pl.when(s_idx == pl.num_programs(2) - 1)
        def _finalize():
            sums_ref[0, 0] = acc_ref[...]

    def x_map_gate(c, b, s):
        t = c * n_s_per + s
        if overshoot:                                      # keep block in-bounds;
            t = jnp.minimum(t, n_s - 1)                    # kernel masks the dup.
        return (b, 0, t)

    partial_sums = pl.pallas_call(
        gate_sum_kernel,
        out_shape=jax.ShapeDtypeStruct((n_split, B, C, 1), jnp.float32),
        grid_spec=pltpu.PrefetchScalarGridSpec(
            num_scalar_prefetch=0,
            grid=(n_split, B, n_s_per),
            in_specs=[pl.BlockSpec((1, C, s_tile), x_map_gate)],
            out_specs=pl.BlockSpec((1, 1, C, 1), lambda c, b, s: (c, b, 0, 0)),
            scratch_shapes=[pltpu.VMEM((C, 1), jnp.float32)],
        ),
        compiler_params=pltpu.CompilerParams(
            dimension_semantics=("parallel", "parallel", "arbitrary"),
            vmem_limit_bytes=vmem_limit),
        cost_estimate=pl.CostEstimate(
            flops=int(B * C * S),
            transcendentals=0,
            bytes_accessed=int(B * C * S * itemsize + n_split * B * C * 4)),
    )(xf)

    # ---- tiny epilogue in plain JAX: mean -> channel conv -> sigmoid --------
    w32 = conv_weight.astype(jnp.float32).reshape(-1)
    mean = jnp.sum(partial_sums, axis=0)[:, :, 0] * (1.0 / S)   # (B, C) f32
    ypad = jnp.pad(mean, ((0, 0), (pad, pad)))
    z = sum(w32[j] * ypad[:, j:j + C] for j in range(k_size))   # (B, C)
    gate = jax.nn.sigmoid(z)[:, :, None]                        # (B, C, 1) f32

    # ------------------------------------------------------------------
    # Phase 2: out = x * gate, lane-dense streaming rescale
    # ------------------------------------------------------------------
    def scale_kernel(x_ref, g_ref, o_ref):
        g = g_ref[0].astype(o_ref.dtype)        # cast the tiny gate, not x
        o_ref[0] = x_ref[0] * g                 # multiply in the input dtype

    out = pl.pallas_call(
        scale_kernel,
        out_shape=jax.ShapeDtypeStruct((B, C, S), x.dtype),
        grid_spec=pltpu.PrefetchScalarGridSpec(
            num_scalar_prefetch=0,
            grid=(B, n_s),
            in_specs=[
                pl.BlockSpec((1, C, s_tile), lambda b, s: (b, 0, s)),  # x tile
                pl.BlockSpec((1, C, 1), lambda b, s: (b, 0, 0)),       # gate
            ],
            out_specs=pl.BlockSpec((1, C, s_tile), lambda b, s: (b, 0, s)),
        ),
        compiler_params=pltpu.CompilerParams(
            dimension_semantics=("parallel", "parallel"),
            vmem_limit_bytes=vmem_limit),
        cost_estimate=pl.CostEstimate(
            flops=int(B * C * S),
            transcendentals=0,
            bytes_accessed=int(2 * B * C * S * itemsize + B * C * 4)),
        input_output_aliases=({0: 0} if donate_x else {}),
    )(xf, gate)

    return out.reshape(B, C, D, H, W)


# --------------------------------------------------------------------------
# Pure-JAX reference (mirrors the PyTorch forward)
# --------------------------------------------------------------------------
def eca3d_ref(x, w):
    B, C = x.shape[:2]
    k = w.shape[0]
    pad = (k - 1) // 2
    y = jnp.mean(x.astype(jnp.float32), axis=(2, 3, 4))           # (B, C)
    ypad = jnp.pad(y, ((0, 0), (pad, pad)))
    z = sum(w[j].astype(jnp.float32) * ypad[:, j:j + C] for j in range(k))
    s = jax.nn.sigmoid(z)
    return (x.astype(jnp.float32) * s[:, :, None, None, None]).astype(x.dtype)


# --------------------------------------------------------------------------
if __name__ == "__main__":
    key = jax.random.PRNGKey(0)
    kx1, kx2, kx3, kx4, kw = jax.random.split(key, 5)

    k_size = 3
    conv_weight = 0.5 * jax.random.normal(kw, (k_size,), dtype=jnp.float32)

    # Case 1: S = 3*6*10 = 180 (not a multiple of 128) -> single full-extent
    # S block, no host padding, no slicing.
    x1 = jax.random.normal(kx1, (2, 4, 3, 6, 10), dtype=jnp.float32)
    out1 = jax.block_until_ready(eca3d_layer(x1, conv_weight))
    ref1 = eca3d_ref(x1, conv_weight)
    assert out1.shape == x1.shape and out1.dtype == x1.dtype
    assert jnp.allclose(out1, ref1, rtol=1e-5, atol=1e-5), "case 1 mismatch"

    # Case 2: C > 8 (full sublane granule), S = 256 (128-aligned).
    x2 = jax.random.normal(kx2, (2, 16, 4, 8, 8), dtype=jnp.float32)
    out2 = jax.block_until_ready(eca3d_layer(x2, conv_weight))
    ref2 = eca3d_ref(x2, conv_weight)
    assert out2.shape == x2.shape and out2.dtype == x2.dtype
    assert jnp.allclose(out2, ref2, rtol=1e-5, atol=1e-5), "case 2 mismatch"

    # Case 3: B = 1, S = 300, forced 128-lane tiles -> multi-block path with
    # a ragged masked tail, the 2-way core split, and an odd tile count
    # (exercises the clamped duplicate tile that must contribute zero).
    x3 = jax.random.normal(kx3, (1, 8, 3, 10, 10), dtype=jnp.float32)
    out3 = jax.block_until_ready(eca3d_layer(x3, conv_weight, max_s_tile=128))
    ref3 = eca3d_ref(x3, conv_weight)
    assert out3.shape == x3.shape and out3.dtype == x3.dtype
    assert jnp.allclose(out3, ref3, rtol=1e-5, atol=1e-5), "case 3 mismatch"

    # Case 4: bf16 input (multiply stays in bf16; looser tolerance).
    x4 = jax.random.normal(kx4, (2, 4, 4, 8, 8), dtype=jnp.bfloat16)
    out4 = jax.block_until_ready(eca3d_layer(x4, conv_weight))
    ref4 = eca3d_ref(x4, conv_weight)
    assert out4.shape == x4.shape and out4.dtype == x4.dtype
    assert jnp.allclose(out4.astype(jnp.float32), ref4.astype(jnp.float32),
                        rtol=5e-2, atol=5e-2), "case 4 mismatch"

    print("KERNEL_OK")
</pallas_src>

<mosaic_0001>
module attributes {stable_mosaic.version = 11 : i64} {
  func.func @gate_sum_kernel(%arg0: i32, %arg1: i32, %arg2: i32, %arg3: memref<1x4x180xf32, #tpu.memory_space<vmem>>, %arg4: memref<1x1x4x1xf32, #tpu.memory_space<vmem>>, %arg5: memref<4x1xf32, #tpu.memory_space<vmem>>) attributes {dimension_semantics = [#tpu.dimension_semantics<parallel>, #tpu.dimension_semantics<parallel>, #tpu.dimension_semantics<arbitrary>], iteration_bounds = array<i64: 1, 2, 1>, scalar_prefetch = 0 : i64, scratch_operands = 1 : i64, tpu.core_type = #tpu.core_type<tc>, window_params = [{transform_indices = @transform_0, window_bounds = array<i64: 1, 4, 180>}, {transform_indices = @transform_1, window_bounds = array<i64: 1, 1, 4, 1>}]} {
    %c0_i32 = arith.constant 0 : i32
    %0 = arith.cmpi eq, %arg2, %c0_i32 : i32
    %1 = arith.extui %0 : i1 to i32
    %c0_i32_0 = arith.constant 0 : i32
    %2 = arith.cmpi ne, %1, %c0_i32_0 : i32
    scf.if %2 {
      %cst_9 = arith.constant 0.000000e+00 : f32
      %13 = vector.broadcast %cst_9 : f32 to vector<4x1xf32>
      %c0_10 = arith.constant 0 : index
      %c0_11 = arith.constant 0 : index
      %14 = vector.load %arg5[%c0_10, %c0_11] : memref<4x1xf32, #tpu.memory_space<vmem>>, vector<4x1xf32>
      tpu.vector_store %arg5[%c0_10, %c0_11], %13 {strides = array<i32>} : memref<4x1xf32, #tpu.memory_space<vmem>>, vector<4x1xf32>,
    } else {
    }
    %c0 = arith.constant 0 : index
    %c0_1 = arith.constant 0 : index
    %c0_2 = arith.constant 0 : index
    %3 = vector.load %arg3[%c0, %c0_1, %c0_2] : memref<1x4x180xf32, #tpu.memory_space<vmem>>, vector<1x4x180xf32>
    %4 = vector.shape_cast %3 : vector<1x4x180xf32> to vector<4x180xf32>
    %c0_3 = arith.constant 0 : index
    %c0_4 = arith.constant 0 : index
    %5 = vector.load %arg5[%c0_3, %c0_4] : memref<4x1xf32, #tpu.memory_space<vmem>>, vector<4x1xf32>
    %cst = arith.constant dense<0.000000e+00> : vector<4xf32>
    %6 = vector.multi_reduction <add>, %4, %cst [1] : vector<4x180xf32> to vector<4xf32>
    %7 = vector.shape_cast %6 : vector<4xf32> to vector<4x1xf32>
    %8 = arith.addf %5, %7 : vector<4x1xf32>
    %c0_5 = arith.constant 0 : index
    %c0_6 = arith.constant 0 : index
    %9 = vector.load %arg5[%c0_5, %c0_6] : memref<4x1xf32, #tpu.memory_space<vmem>>, vector<4x1xf32>
    tpu.vector_store %arg5[%c0_5, %c0_6], %8 {strides = array<i32>} : memref<4x1xf32, #tpu.memory_space<vmem>>, vector<4x1xf32>,
    %c0_i32_7 = arith.constant 0 : i32
    %10 = arith.cmpi eq, %arg2, %c0_i32_7 : i32
    %11 = arith.extui %10 : i1 to i32
    %c0_i32_8 = arith.constant 0 : i32
    %12 = arith.cmpi ne, %11, %c0_i32_8 : i32
    scf.if %12 {
      %c0_9 = arith.constant 0 : index
      %c0_10 = arith.constant 0 : index
      %13 = vector.load %arg5[%c0_9, %c0_10] : memref<4x1xf32, #tpu.memory_space<vmem>>, vector<4x1xf32>
      %c0_11 = arith.constant 0 : index
      %c0_12 = arith.constant 0 : index
      %c0_13 = arith.constant 0 : index
      %c0_14 = arith.constant 0 : index
      %14 = vector.load %arg4[%c0_11, %c0_12, %c0_13, %c0_14] : memref<1x1x4x1xf32, #tpu.memory_space<vmem>>, vector<1x1x4x1xf32>
      %15 = vector.shape_cast %14 : vector<1x1x4x1xf32> to vector<4x1xf32>
      %16 = vector.shape_cast %13 : vector<4x1xf32> to vector<1x1x4x1xf32>
      tpu.vector_store %arg4[%c0_11, %c0_12, %c0_13, %c0_14], %16 {strides = array<i32>} : memref<1x1x4x1xf32, #tpu.memory_space<vmem>>, vector<1x1x4x1xf32>,
    } else {
    }
    return
  }
  func.func @transform_0(%arg0: i32, %arg1: i32, %arg2: i32) -> (i32, i32, i32) {
    %c1_i32 = arith.constant 1 : i32
    %0 = arith.muli %arg0, %c1_i32 : i32
    %1 = arith.addi %0, %arg2 : i32
    %c0_i32 = arith.constant 0 : i32
    %c0_i32_0 = arith.constant 0 : i32
    return %arg1, %c0_i32, %1 : i32, i32, i32
  }
  func.func @transform_1(%arg0: i32, %arg1: i32, %arg2: i32) -> (i32, i32, i32, i32) {
    %c0_i32 = arith.constant 0 : i32
    %c0_i32_0 = arith.constant 0 : i32
    %c0_i32_1 = arith.constant 0 : i32
    return %arg0, %arg1, %c0_i32, %c0_i32_0 : i32, i32, i32, i32
  }
}

module attributes {stable_mosaic.version = 11 : i64} {
  func.func @scale_kernel(%arg0: i32, %arg1: i32, %arg2: memref<1x4x180xf32, #tpu.memory_space<vmem>>, %arg3: memref<1x4x1xf32, #tpu.memory_space<vmem>>, %arg4: memref<1x4x180xf32, #tpu.memory_space<vmem>>) attributes {dimension_semantics = [#tpu.dimension_semantics<parallel>, #tpu.dimension_semantics<parallel>], iteration_bounds = array<i64: 2, 1>, scalar_prefetch = 0 : i64, scratch_operands = 0 : i64, tpu.core_type = #tpu.core_type<tc>, window_params = [{transform_indices = @transform_0, window_bounds = array<i64: 1, 4, 180>}, {transform_indices = @transform_1, window_bounds = array<i64: 1, 4, 1>}, {transform_indices = @transform_2, window_bounds = array<i64: 1, 4, 180>}]} {
    %c0 = arith.constant 0 : index
    %c0_0 = arith.constant 0 : index
    %c0_1 = arith.constant 0 : index
    %0 = vector.load %arg3[%c0, %c0_0, %c0_1] : memref<1x4x1xf32, #tpu.memory_space<vmem>>, vector<1x4x1xf32>
    %1 = vector.shape_cast %0 : vector<1x4x1xf32> to vector<4x1xf32>
    %c0_2 = arith.constant 0 : index
    %c0_3 = arith.constant 0 : index
    %c0_4 = arith.constant 0 : index
    %2 = vector.load %arg2[%c0_2, %c0_3, %c0_4] : memref<1x4x180xf32, #tpu.memory_space<vmem>>, vector<1x4x180xf32>
    %3 = vector.shape_cast %2 : vector<1x4x180xf32> to vector<4x180xf32>
    %4 = vector.broadcast %1 : vector<4x1xf32> to vector<4x180xf32>
    %5 = arith.mulf %3, %4 : vector<4x180xf32>
    %c0_5 = arith.constant 0 : index
    %c0_6 = arith.constant 0 : index
    %c0_7 = arith.constant 0 : index
    %6 = vector.load %arg4[%c0_5, %c0_6, %c0_7] : memref<1x4x180xf32, #tpu.memory_space<vmem>>, vector<1x4x180xf32>
    %7 = vector.shape_cast %6 : vector<1x4x180xf32> to vector<4x180xf32>
    %8 = vector.shape_cast %5 : vector<4x180xf32> to vector<1x4x180xf32>
    tpu.vector_store %arg4[%c0_5, %c0_6, %c0_7], %8 {strides = array<i32>} : memref<1x4x180xf32, #tpu.memory_space<vmem>>, vector<1x4x180xf32>,
    return
  }
  func.func @transform_0(%arg0: i32, %arg1: i32) -> (i32, i32, i32) {
    %c0_i32 = arith.constant 0 : i32
    %c0_i32_0 = arith.constant 0 : i32
    return %arg0, %c0_i32, %arg1 : i32, i32, i32
  }
  func.func @transform_1(%arg0: i32, %arg1: i32) -> (i32, i32, i32) {
    %c0_i32 = arith.constant 0 : i32
    %c0_i32_0 = arith.constant 0 : i32
    %c0_i32_1 = arith.constant 0 : i32
    return %arg0, %c0_i32, %c0_i32_0 : i32, i32, i32
  }
  func.func @transform_2(%arg0: i32, %arg1: i32) -> (i32, i32, i32) {
    %c0_i32 = arith.constant 0 : i32
    %c0_i32_0 = arith.constant 0 : i32
    return %arg0, %c0_i32, %arg1 : i32, i32, i32
  }
}

</mosaic_0001>

<bundles_post_ra>
// kernel: eca3d_layer.2
= control target key start
LH: loop header
LB: loop body
LE: loop exit
PB: predicated region body
PF: predicated region fallthrough
CT: control target
= control target key end

     0   :  { %6 = vsyncpa [#allocation4], 0  ;;  %s674_s0 = inlined_call_operand.hbm [shape: f32[2,4,180], index: 0, kind: input, shape index: {}]   ;;  %s675_s1 = inlined_call_operand.hbm [shape: f32[1,2,4,1], index: 1, kind: output, shape index: {}]  }
   0x1   :  { %8 = vsyncpa [#allocation4 + $0x1], 0 }
   0x2   :  { %9 = vsyncpa [#allocation5], 0 }
   0x3   :  { %11 = vsyncpa [#allocation5 + $0x1], 0  ;;  %s498_s6 = smov 0   ;;  %s500_s7 = smov 0  }
   0x4   :  { %s502_s8 = smov 0   ;;  %s504_s9 = smov 0  }
   0x5   :  { %s506_s10 = smov 0   ;;  %s508_s11 = smov 0  }
   0x6 LB: > { %s292_s12 = sadd.s32 4294967295, %s483_s11   ;;  %s293_s13 = sadd.s32 4294967294, %s483_s11   ;;  %s483_s11 = sphi %s508_s11, %s17_s11   ;;  %s479_s10 = sphi %s506_s10, %s691_s10   ;;  %s475_s9 = sphi %s504_s9, %s690_s9   ;;  %s471_s8 = sphi %s502_s8, %s689_s8   ;;  %s467_s7 = sphi %s500_s7, %s688_s7   ;;  %s463_s6 = sphi %s498_s6, %s687_s6  }
   0x7   : > { %s32_s14 = sadd.s32 1, %s479_s10  ;;  %s47_s15 = sadd.s32 1, %s471_s8 }
   0x8   : > { %p34_p0 = scmp.ge.s32.totalorder %s32_s14, 2  ;;  %p54_p1 = scmp.ne.s32.totalorder %s471_s8, %s467_s7 }
   0x9   : > { %p55_p2 = scmp.eq.s32.totalorder %s483_s11, 0  ;;  %p60_p3 = scmp.ne.s32.totalorder %s467_s7, %s463_s6 }
   0xa   : > { %s693_s14 = smov (%p34_p0, %s32_s14), 0  ;;  %p61_p5 = scmp.eq.s32.totalorder %s292_s12, 0 }
   0xb   : > { %p539_p4 = por %p55_p2, %p54_p1  ;;  %s42_s17 = ssub.s32 %s479_s10, %s693_s14 }
   0xc   : > { %p86_p6 = scmp.eq.s32.totalorder %s292_s12, 1  ;;  %p45_p7 = scmp.eq.s32.totalorder %s42_s17, 0 }
   0xd   : > { %p545_p8 = por %p61_p5, %p60_p3  ;;  %p92_p10 = scmp.eq.s32.totalorder %s293_s13, 1 }
   0xe   : > { %p549_p9 = por %p86_p6, %p54_p1  ;;  %p319_p13 = scmp.lt.s32.totalorder %s483_s11, 2 }
   0xf   : > { %s554_s20 = scalar_select %p45_p7, %s471_s8, %s47_s15  }
  0x10   : > { %s679_s19 = scalar_select %p549_p9, 1, 0 }
  0x11   : > { %p556_p11 = por %p92_p10, %p60_p3  ;;  %s112_s22 = sand.u32 1, %s471_s8  }
  0x12   : > { %s296_s23 = sshll.u32 %s112_s22, 3  ;;  %s306_s24 = sshll.u32 %s479_s10, 7 }
  0x13   : > { %s680_s21 = scalar_select %p556_p11, 1, 0 }
  0x14   : > { %s567_s27 = scalar_lea.hbm %s674_s0, %s306_s24  ;;  %s116_s28 = scalar_lea.vmem [#allocation3], %s296_s23 }
  0x15   : > { %s127_s29 = sshll.u32 %s116_s28, 4  ;;  %p573_p0 = pnand %p319_p13, %p539_p4  ;;  %s569_s29 = int_to_ptr.vmem [resolvable:$true] %s127_s29 }
  0x16   : > { %s113_s2 = scalar_lea.sflag [#allocation4], %s112_s22  ;;  %s371_s3 = scalar_lea.hbm %s567_s27, 128 }
  0x17   : > { %p372_p3 = scmp.ne.s32.totalorder %s567_s27, %s371_s3  ;;  %p373_p5 = pneg %p573_p0 }
  0x18   : > { %s376_s12 = scalar_lea.hbm %s674_s0, 256  ;;  %p377_p4 = scmp.lt.u32.totalorder %s567_s27, %s674_s0 }
  0x19   : > { %p374_p6 = pnand %p373_p5, %p372_p3  ;;  %p378_p10 = scmp.lt.u32.totalorder %s376_s12, %s371_s3 }
  0x1a   : > { %p380_p12 = scmp.lt.u32.totalorder %s371_s3, %s567_s27 }
  0x1b   : > { %p375_p7 = pneg %p374_p6  ;;  %p379_p13 = por %p378_p10, %p377_p4 }
  0x1d   : > { %p381_p1 = por %p380_p12, %p379_p13 }
  0x1f   : > { %p382_p2 = pnand %p381_p1, %p375_p7 }
  0x21   : > { %385 = shalt.err (!%p382_p2)
}
  0x22   : > { %s386_s16 = scalar_lea.vmem %s569_s29, 128  ;;  %s485_s17 = smov [#allocation3]  }
  0x23   : > { %p387_p3 = scmp.ne.s32.totalorder %s569_s29, %s386_s16  ;;  %s391_s22 = sshll.u32 %s485_s17, 4  ;;  %s392_s22 = int_to_ptr.vmem [resolvable:$false] %s391_s22 }
  0x24   : > { %s393_s23 = scalar_lea.vmem %s392_s22, 256  ;;  %p394_p9 = scmp.lt.s32.totalorder %s569_s29, %s392_s22 }
  0x25   : > { %p389_p6 = pnand %p387_p3, %p373_p5  ;;  %p395_p4 = scmp.lt.s32.totalorder %s393_s23, %s386_s16 }
  0x27   : > { %p390_p11 = pneg %p389_p6  ;;  %p396_p10 = por %p395_p4, %p394_p9 }
  0x29   : > { %p397_p12 = pnand %p396_p10, %p390_p11 }
  0x2b   : > { %400 = shalt.err (!%p397_p12)
}
  0x2c   : > { %314 = dma.hbm_to_vmem [thread:$0]  (!%p573_p0), %s567_s27, 128, %s569_s29, %s113_s2  }
  0x2d   : > { %p682_p1 = scmp.lt.s32.totalorder %s483_s11, 3  ;;  %p683_p2 = scmp.ge.s32.totalorder %s483_s11, 1 }
  0x2f   : > { %p133_p5 = pnand %p683_p2, %p682_p1 }
  0x30   : > { %s609_s24 = sand.u32 (!%p133_p5), 1, %s467_s7  }
  0x31   : > { %136 = sbr.rel (%p133_p5) target bundleno = 229 (0xe5), region = 24  ;;  %s300_s25 = sshll.u32 (!%p133_p5), %s609_s24, 3 }
  0x32   : > { %s139_s26 = scalar_lea.sflag (!%p133_p5), [#allocation4], %s609_s24  ;;  %s142_s28 = scalar_lea.vmem (!%p133_p5), [#allocation3], %s300_s25 }
  0x38   : > { %454 = dma.done.wait (%p545_p8), %s139_s26, 128  }
  0x39   : > { %456 = vsyncadd (%p545_p8), %s139_s26, 4294967168  ;;  %vm167_vm0 = vcmask 3072   ;;  %v486_v0 = vmov 0.0   ;;  %vm174_vm1 = vcmask 1043456   ;;  %v169_v1 = vld [vmem:[%s142_s28] sm:$0xff]  ;;  %vm176_vm2 = vcmask 420864  }
  0x3a   : > { %168 = vst.msk [vmem:[#allocation2] sm:$0xf] %vm167_vm0, %v486_v0  ;;  %v172_v2 = vcombine.high %v169_v1, %v169_v1  ;;  %v175_v3 = vsel %vm174_vm1, %v169_v1, 0.0  ;;  %s301_s18 = sshll.u32 %s609_s24, 2  ;;  %s303_s27 = sshll.u32 %s475_s9, 6 }
  0x3b   : > { %s160_s29 = scalar_lea.vmem [#allocation6], %s301_s18  ;;  %s624_s4 = scalar_lea.hbm %s675_s1, %s303_s27 }
  0x3c   : > { %v177_v4 = vsel %vm176_vm2, %v172_v2, 0.0  ;;  %s205_s30 = sshll.u32 %s160_s29, 4  ;;  %s190_s5 = scalar_lea.sflag [#allocation5], %s609_s24  ;;  %s626_s30 = int_to_ptr.vmem [resolvable:$true] %s205_s30 }
  0x3d   : > { %v178_v5 = vadd.f32 %v177_v4, %v175_v3  ;;  %s401_s12 = scalar_lea.vmem %s626_s30, 64  ;;  %p684_p9 = scmp.ne.s32.totalorder %s679_s19, 0 }
  0x3e   : > { %p402_p8 = scmp.ne.s32.totalorder %s626_s30, %s401_s12  ;;  %s487_s9 = smov [#allocation6]  }
  0x3f   : > { %179 = vadd.xlane.f32.xlu0 %v178_v5  ;;  %s405_s13 = sshll.u32 %s487_s9, 4  ;;  %s406_s13 = int_to_ptr.vmem [resolvable:$false] %s405_s13 }
  0x40   : > { %p403_p11 = pnand %p402_p8, %p684_p9  ;;  %s407_s15 = scalar_lea.vmem %s406_s13, 128 }
  0x41   : > { %v170_v6 = vld [vmem:[#allocation2] sm:$0xf]  ;;  %p408_p7 = scmp.lt.s32.totalorder %s626_s30, %s406_s13  ;;  %p409_p13 = scmp.lt.s32.totalorder %s407_s15, %s401_s12 }
  0x42   : > { %p404_p0 = pneg %p403_p11 }
  0x43   : > { %p410_p3 = por %p409_p13, %p408_p7 }
  0x45   : > { %p411_p6 = pnand %p410_p3, %p404_p0 }
  0xcc   : > { %v180_v7 = vpop.xlane.xlu0 %179 }
  0xcd   : > { %v181_v8 = vadd.f32 %v180_v7, %v170_v6 }
  0xcf   : > { %183 = vst.msk [vmem:[#allocation2] sm:$0xf] %vm167_vm0, %v181_v8 }
  0xd6   : > { %v187_v9 = vld [vmem:[#allocation2] sm:$0xf] }
  0xd7   : > { %188 = vst.msk [vmem:[%s160_s29] sm:$0xf] %vm167_vm0, %v187_v9 }
  0xd8   : > { %414 = shalt.err (!%p411_p6)
}
  0xd9   : > { %s415_s16 = scalar_lea.hbm %s624_s4, 64  ;;  %s419_s23 = scalar_lea.hbm %s675_s1, 128 }
  0xda   : > { %p416_p4 = scmp.ne.s32.totalorder %s624_s4, %s415_s16  ;;  %p420_p1 = scmp.lt.u32.totalorder %s624_s4, %s675_s1 }
  0xdb   : > { %p421_p2 = scmp.lt.u32.totalorder %s419_s23, %s415_s16  ;;  %p423_p8 = scmp.lt.u32.totalorder %s415_s16, %s624_s4 }
  0xdc   : > { %p417_p10 = pnand %p416_p4, %p684_p9 }
  0xdd   : > { %p422_p5 = por %p421_p2, %p420_p1 }
  0xde   : > { %p418_p12 = pneg %p417_p10 }
  0xdf   : > { %p424_p11 = por %p423_p8, %p422_p5 }
  0xe1   : > { %p425_p0 = pnand %p424_p11, %p418_p12 }
  0xe3   : > { %428 = shalt.err (!%p425_p0)
}
  0xe4   : > { %309 = dma.vmem_to_hbm [thread:$0]  (%p684_p9), %s626_s30, 64, %s624_s4, %s190_s5  }
  0xe5 PF: > { %s217_s26 = sand.u32 1, %s463_s6   ;;  %p685_p7 = scmp.ne.s32.totalorder %s680_s21, 0 }
  0xe6   : > { %p686_p13 = scmp.ge.s32.totalorder %s483_s11, 2  ;;  %s218_s28 = scalar_lea.sflag [#allocation5], %s217_s26 }
  0xe8   : > { %p316_p3 = pnand %p686_p13, %p685_p7 }
  0xea   : > { %458 = dma.done.wait (!%p316_p3), %s218_s28, 64  }
  0xeb   : > { %460 = vsyncadd (!%p316_p3), %s218_s28, 4294967232  ;;  %s17_s11 = sadd.s32 1, %s483_s11   ;;  %s687_s6 = smov %s467_s7 }
  0xec   : > { %p14_p6 = scmp.ge.s32.totalorder %s17_s11, 4   ;;  %s688_s7 = smov %s471_s8 }
  0xed   : > { %s689_s8 = smov %s554_s20  ;;  %s690_s9 = smov %s479_s10 }
  0xee   : > { %s691_s10 = smov %s693_s14  ;;  %16 = sbr.rel (!%p14_p6) target bundleno = 6 (0x6), region = 77 }
  0xf5   :  { %223 = vsyncpa [#allocation4], 1 }
  0xf6   :  { %225 = vsyncpa [#allocation4 + $0x1], 1 }
  0xf7   :  { %226 = vsyncpa [#allocation5], 1 }
  0xf8   :  { %228 = vsyncpa [#allocation5 + $0x1], 1 }

// kernel: eca3d_layer.3
= control target key start
LH: loop header
LB: loop body
LE: loop exit
PB: predicated region body
PF: predicated region fallthrough
CT: control target
= control target key end

     0   :  { %7 = vsyncpa [#allocation3], 0  ;;  %s833_s0 = inlined_call_operand.hbm [shape: f32[2,4,180], index: 0, kind: input, shape index: {}]   ;;  %s834_s1 = inlined_call_operand.hbm [shape: f32[2,4,1], index: 1, kind: input, shape index: {}]   ;;  %s835_s2 = inlined_call_operand.hbm [shape: f32[2,4,180], index: 2, kind: output, shape index: {}]  }
   0x1   :  { %9 = vsyncpa [#allocation3 + $0x1], 0 }
   0x2   :  { %10 = vsyncpa [#allocation6], 0 }
   0x3   :  { %12 = vsyncpa [#allocation6 + $0x1], 0 }
   0x4   :  { %13 = vsyncpa [#allocation4], 0 }
   0x5   :  { %15 = vsyncpa [#allocation4 + $0x1], 0  ;;  %s618_s9 = smov 0   ;;  %s620_s10 = smov 0  }
   0x6   :  { %s622_s11 = smov 0   ;;  %s624_s12 = smov 0  }
   0x7   :  { %s626_s13 = smov 0   ;;  %s628_s14 = smov 0  }
   0x8 LB: > { %s360_s15 = sadd.s32 4294967295, %s596_s14   ;;  %s361_s16 = sadd.s32 4294967294, %s596_s14   ;;  %s596_s14 = sphi %s628_s14, %s21_s14   ;;  %s592_s13 = sphi %s626_s13, %s855_s13   ;;  %s588_s12 = sphi %s624_s12, %s854_s12   ;;  %s584_s11 = sphi %s622_s11, %s853_s11   ;;  %s580_s10 = sphi %s620_s10, %s852_s10   ;;  %s576_s9 = sphi %s618_s9, %s851_s9  }
   0x9   : > { %s33_s17 = sadd.s32 1, %s592_s13  ;;  %s42_s18 = sadd.s32 1, %s584_s11 }
   0xa   : > { %p35_p0 = scmp.ge.s32.totalorder %s33_s17, 2  ;;  %p49_p1 = scmp.ne.s32.totalorder %s584_s11, %s580_s10 }
   0xb   : > { %p50_p2 = scmp.eq.s32.totalorder %s596_s14, 0  ;;  %p55_p3 = scmp.ne.s32.totalorder %s580_s10, %s576_s9 }
   0xc   : > { %s857_s17 = smov (%p35_p0, %s33_s17), 0  ;;  %p56_p5 = scmp.eq.s32.totalorder %s360_s15, 0 }
   0xd   : > { %p659_p4 = por %p50_p2, %p49_p1  ;;  %s37_s20 = ssub.s32 %s592_s13, %s857_s17 }
   0xe   : > { %p107_p6 = scmp.eq.s32.totalorder %s360_s15, 1  ;;  %p40_p7 = scmp.eq.s32.totalorder %s37_s20, 0 }
   0xf   : > { %p665_p8 = por %p56_p5, %p55_p3  ;;  %p113_p10 = scmp.eq.s32.totalorder %s361_s16, 1 }
  0x10   : > { %p669_p9 = por %p107_p6, %p49_p1  ;;  %p397_p13 = scmp.lt.s32.totalorder %s596_s14, 2 }
  0x11   : > { %s839_s21 = scalar_select %p665_p8, 1, 0 }
  0x12   : > { %s840_s22 = scalar_select %p669_p9, 1, 0 }
  0x13   : > { %s674_s23 = scalar_select %p40_p7, %s584_s11, %s42_s18  }
  0x14   : > { %p676_p11 = por %p113_p10, %p55_p3  ;;  %s683_s25 = sand.u32 1, %s584_s11  }
  0x15   : > { %s364_s26 = sshll.u32 %s683_s25, 3  ;;  %s378_s27 = sshll.u32 %s592_s13, 7 }
  0x16   : > { %s841_s24 = scalar_select %p676_p11, 1, 0 }
  0x17   : > { %s690_s30 = scalar_lea.hbm %s833_s0, %s378_s27  ;;  %s137_s3 = scalar_lea.vmem [#allocation2], %s364_s26 }
  0x18   : > { %s147_s4 = sshll.u32 %s137_s3, 4  ;;  %p696_p0 = pnand %p397_p13, %p659_p4  ;;  %s692_s4 = int_to_ptr.vmem [resolvable:$true] %s147_s4 }
  0x19   : > { %s134_s6 = scalar_lea.sflag [#allocation3], %s683_s25  ;;  %s450_s7 = scalar_lea.hbm %s690_s30, 128 }
  0x1a   : > { %p451_p3 = scmp.ne.s32.totalorder %s690_s30, %s450_s7  ;;  %p452_p5 = pneg %p696_p0 }
  0x1b   : > { %s455_s16 = scalar_lea.hbm %s833_s0, 256  ;;  %p456_p4 = scmp.lt.u32.totalorder %s690_s30, %s833_s0 }
  0x1c   : > { %p453_p6 = pnand %p452_p5, %p451_p3  ;;  %p457_p10 = scmp.lt.u32.totalorder %s455_s16, %s450_s7 }
  0x1d   : > { %p459_p12 = scmp.lt.u32.totalorder %s450_s7, %s690_s30 }
  0x1e   : > { %p454_p7 = pneg %p453_p6  ;;  %p458_p13 = por %p457_p10, %p456_p4 }
  0x20   : > { %p460_p1 = por %p459_p12, %p458_p13 }
  0x22   : > { %p461_p2 = pnand %p460_p1, %p454_p7 }
  0x24   : > { %464 = shalt.err (!%p461_p2)
}
  0x25   : > { %s465_s20 = scalar_lea.vmem %s692_s4, 128  ;;  %s598_s26 = smov [#allocation2]  }
  0x26   : > { %p466_p3 = scmp.ne.s32.totalorder %s692_s4, %s465_s20  ;;  %s470_s27 = sshll.u32 %s598_s26, 4  ;;  %s471_s27 = int_to_ptr.vmem [resolvable:$false] %s470_s27 }
  0x27   : > { %s472_s28 = scalar_lea.vmem %s471_s27, 256  ;;  %p473_p9 = scmp.lt.s32.totalorder %s692_s4, %s471_s27 }
  0x28   : > { %p468_p6 = pnand %p466_p3, %p452_p5  ;;  %p474_p4 = scmp.lt.s32.totalorder %s472_s28, %s465_s20 }
  0x2a   : > { %p469_p11 = pneg %p468_p6  ;;  %p475_p10 = por %p474_p4, %p473_p9 }
  0x2c   : > { %p476_p12 = pnand %p475_p10, %p469_p11 }
  0x2e   : > { %479 = shalt.err (!%p476_p12)
}
  0x2f   : > { %389 = dma.hbm_to_vmem [thread:$0]  (!%p696_p0), %s690_s30, 128, %s692_s4, %s134_s6  }
  0x30   : > { %p843_p1 = scmp.lt.s32.totalorder %s596_s14, 3  ;;  %p844_p2 = scmp.ge.s32.totalorder %s596_s14, 1 }
  0x31   : > { %s367_s3 = sshll.u32 %s683_s25, 2  ;;  %s368_s7 = sshll.u32 %s592_s13, 6 }
  0x32   : > { %p732_p7 = pnand %p844_p2, %p843_p1  ;;  %s741_s16 = scalar_lea.hbm %s834_s1, %s368_s7 }
  0x33   : > { %s158_s18 = scalar_lea.vmem [#allocation5], %s367_s3  ;;  %s155_s30 = scalar_lea.sflag [#allocation6], %s683_s25 }
  0x34   : > { %s845_s29 = scalar_select %p732_p7, 1, 0 }
  0x35   : > { %s165_s19 = sshll.u32 %s158_s18, 4  ;;  %s480_s4 = scalar_lea.hbm %s741_s16, 64  ;;  %s166_s19 = int_to_ptr.vmem [resolvable:$true] %s165_s19 }
  0x36   : > { %p481_p9 = scmp.ne.s32.totalorder %s741_s16, %s480_s4  ;;  %s485_s26 = scalar_lea.hbm %s834_s1, 128 }
  0x37   : > { %p486_p3 = scmp.lt.u32.totalorder %s741_s16, %s834_s1  ;;  %p487_p6 = scmp.lt.u32.totalorder %s485_s26, %s480_s4 }
  0x38   : > { %p483_p11 = pnand %p481_p9, %p452_p5  ;;  %p489_p10 = scmp.lt.u32.totalorder %s480_s4, %s741_s16 }
  0x39   : > { %p488_p4 = por %p487_p6, %p486_p3 }
  0x3a   : > { %p484_p13 = pneg %p483_p11 }
  0x3b   : > { %p490_p12 = por %p489_p10, %p488_p4 }
  0x3d   : > { %p491_p1 = pnand %p490_p12, %p484_p13 }
  0x3f   : > { %494 = shalt.err (!%p491_p1)
}
  0x40   : > { %s495_s25 = scalar_lea.vmem %s166_s19, 64  ;;  %s599_s3 = smov [#allocation5]  }
  0x41   : > { %p496_p2 = scmp.ne.s32.totalorder %s166_s19, %s495_s25  ;;  %s500_s7 = sshll.u32 %s599_s3, 4  ;;  %s501_s7 = int_to_ptr.vmem [resolvable:$false] %s500_s7 }
  0x42   : > { %s502_s8 = scalar_lea.vmem %s501_s7, 128  ;;  %p503_p8 = scmp.lt.s32.totalorder %s166_s19, %s501_s7 }
  0x43   : > { %p498_p9 = pnand %p496_p2, %p452_p5  ;;  %p504_p7 = scmp.lt.s32.totalorder %s502_s8, %s495_s25 }
  0x45   : > { %p499_p11 = pneg %p498_p9  ;;  %p505_p3 = por %p504_p7, %p503_p8 }
  0x47   : > { %p506_p6 = pnand %p505_p3, %p499_p11 }
  0x49   : > { %509 = shalt.err (!%p506_p6)
}
  0x4a   : > { %392 = dma.hbm_to_vmem [thread:$0]  (!%p696_p0), %s741_s16, 64, %s166_s19, %s155_s30  }
  0x4b   : > { %p846_p13 = scmp.ne.s32.totalorder %s845_s29, 0 }
  0x4c   : > { %s766_s15 = sand.u32 (!%p846_p13), 1, %s580_s10   ;;  %p847_p5 = scmp.ne.s32.totalorder (!%p846_p13), %s839_s21, 0 }
  0x4d   : > { %174 = sbr.rel (%p846_p13) target bundleno = 236 (0xec), region = 28  ;;  %s370_s18 = sshll.u32 (!%p846_p13), %s766_s15, 3 }
  0x4e   : > { %s177_s4 = scalar_lea.sflag (!%p846_p13), [#allocation3], %s766_s15  ;;  %s180_s6 = scalar_lea.vmem (!%p846_p13), [#allocation2], %s370_s18 }
  0x54   : > { %563 = dma.done.wait (%p847_p5), %s177_s4, 128  }
  0x55   : > { %565 = vsyncadd (%p847_p5), %s177_s4, 4294967168  ;;  %s371_s5 = sshll.u32 %s766_s15, 2  ;;  %s186_s29 = scalar_lea.sflag [#allocation6], %s766_s15 }
  0x56   : > { %s189_s16 = scalar_lea.vmem [#allocation5], %s371_s5 }
  0x57   : > { %567 = dma.done.wait (%p847_p5), %s186_s29, 64  }
  0x58   : > { %569 = vsyncadd (%p847_p5), %s186_s29, 4294967232  ;;  %v600_v0 = vmov 0   ;;  %v217_v1 = vld [vmem:[%s189_s16] sm:$0xf]  ;;  %v601_v2 = vmov 839922192   ;;  %v226_v4 = vlaneseq }
  0x59   : > { %449 = vset.pattern.permute.xlu0 %v600_v0  ;;  %v224_v3 = vunpack.c.l.s4 %v601_v2  ;;  %vm232_vm0 = vcmask 1043456   ;;  %vm233_vm1 = vcmask 424964   ;;  %v218_v8 = vld [vmem:[%s180_s6] sm:$0xff]  ;;  %s379_s19 = sshll.u32 %s588_s12, 7  ;;  %s214_s21 = scalar_lea.vmem [#allocation7], %s370_s18 }
  0x5a   : > { %221 = vperm.xlu0 %449, %v217_v1   ;;  %v227_v6 = vshrl.u32 %v226_v4, 7  ;;  %s253_s30 = sshll.u32 %s214_s21, 4  ;;  %vm234_vm2 = vmor %vm233_vm1, %vm232_vm0  ;;  %s784_s27 = scalar_lea.hbm %s835_s2, %s379_s19  ;;  %s786_s30 = int_to_ptr.vmem [resolvable:$true] %s253_s30 }
  0x5b   : > { %v225_v5 = vunpack.c.0.s8 %v224_v3  ;;  %s237_s28 = scalar_lea.sflag [#allocation4], %s766_s15  ;;  %s510_s25 = scalar_lea.vmem %s786_s30, 128 }
  0x5c   : > { %p511_p8 = scmp.ne.s32.totalorder %s786_s30, %s510_s25  ;;  %p848_p0 = scmp.ne.s32.totalorder %s840_s22, 0 }
  0x5d   : > { %v228_v7 = vsub.s32 %v225_v5, %v227_v6  ;;  %s602_s12 = smov [#allocation7]  }
  0x5e   : > { %p512_p7 = pnand %p511_p8, %p848_p0  ;;  %s514_s3 = sshll.u32 %s602_s12, 4  ;;  %s515_s3 = int_to_ptr.vmem [resolvable:$false] %s514_s3 }
  0x5f   : > { %s516_s7 = scalar_lea.vmem %s515_s3, 256  ;;  %p517_p10 = scmp.lt.s32.totalorder %s786_s30, %s515_s3 }
  0x60   : > { %p513_p4 = pneg %p512_p7  ;;  %p518_p12 = scmp.lt.s32.totalorder %s516_s7, %s510_s25 }
  0x62   : > { %p519_p1 = por %p518_p12, %p517_p10 }
  0x64   : > { %p520_p2 = pnand %p519_p1, %p513_p4 }
  0xd9   : > { %v222_v9 = vpop.permute.xlu0 %221 }
  0xda   : > { %v229_v10 = vrot.slane %v222_v9, %v228_v7 }
  0xdc   : > { %v231_v11 = vmul.f32 %v229_v10, %v218_v8 }
  0xde   : > { %235 = vst.msk [vmem:[%s214_s21] sm:$0xff] %vm234_vm2, %v231_v11 }
  0xdf   : > { %523 = shalt.err (!%p520_p2)
}
  0xe0   : > { %s524_s8 = scalar_lea.hbm %s784_s27, 128  ;;  %s528_s4 = scalar_lea.hbm %s835_s2, 256 }
  0xe1   : > { %p525_p9 = scmp.ne.s32.totalorder %s784_s27, %s524_s8  ;;  %p529_p6 = scmp.lt.u32.totalorder %s784_s27, %s835_s2 }
  0xe2   : > { %p530_p13 = scmp.lt.u32.totalorder %s528_s4, %s524_s8  ;;  %p532_p8 = scmp.lt.u32.totalorder %s524_s8, %s784_s27 }
  0xe3   : > { %p526_p11 = pnand %p525_p9, %p848_p0 }
  0xe4   : > { %p531_p5 = por %p530_p13, %p529_p6 }
  0xe5   : > { %p527_p3 = pneg %p526_p11 }
  0xe6   : > { %p533_p7 = por %p532_p8, %p531_p5 }
  0xe8   : > { %p534_p4 = pnand %p533_p7, %p527_p3 }
  0xea   : > { %537 = shalt.err (!%p534_p4)
}
  0xeb   : > { %384 = dma.vmem_to_hbm [thread:$0]  (%p848_p0), %s786_s30, 128, %s784_s27, %s237_s28  }
  0xec PF: > { %s265_s29 = sand.u32 1, %s576_s9   ;;  %p849_p10 = scmp.ne.s32.totalorder %s841_s24, 0 }
  0xed   : > { %p850_p12 = scmp.ge.s32.totalorder %s596_s14, 2  ;;  %s266_s16 = scalar_lea.sflag [#allocation4], %s265_s29 }
  0xef   : > { %p394_p1 = pnand %p850_p12, %p849_p10 }
  0xf1   : > { %571 = dma.done.wait (!%p394_p1), %s266_s16, 128  }
  0xf2   : > { %573 = vsyncadd (!%p394_p1), %s266_s16, 4294967168  ;;  %s21_s14 = sadd.s32 1, %s596_s14   ;;  %s851_s9 = smov %s580_s10 }
  0xf3   : > { %p18_p2 = scmp.ge.s32.totalorder %s21_s14, 4   ;;  %s852_s10 = smov %s584_s11 }
  0xf4   : > { %s853_s11 = smov %s674_s23  ;;  %s854_s12 = smov %s592_s13 }
  0xf5   : > { %s855_s13 = smov %s857_s17  ;;  %20 = sbr.rel (!%p18_p2) target bundleno = 8 (0x8), region = 86 }
  0xfc   :  { %271 = vsyncpa [#allocation3], 1 }
  0xfd   :  { %273 = vsyncpa [#allocation3 + $0x1], 1 }
  0xfe   :  { %274 = vsyncpa [#allocation6], 1 }
  0xff   :  { %276 = vsyncpa [#allocation6 + $0x1], 1 }
 0x100   :  { %277 = vsyncpa [#allocation4], 1 }
 0x101   :  { %279 = vsyncpa [#allocation4 + $0x1], 1 }

</bundles_post_ra>
